<compile_context>
chip_gen: v7x
topology: tpu7x:2x2x1
jax: 0.10.0
libtpu: 0.0.40
codegen_flags: <defaults>
</compile_context>

<pallas_src>
import jax
import jax.numpy as jnp
from jax import lax
from jax.experimental import pallas as pl
from jax.experimental.pallas import tpu as pltpu


def _round_up(x, m):
    return ((x + m - 1) // m) * m


def _vmem_budgets():
    """Generation-aware VMEM budgets.

    Returns (block_budget_bytes, vmem_limit_bytes): block_budget bounds
    2 * (in_block + out_block) (double-buffered, (8,128)-padded), vmem_limit is
    handed to the compiler as the scoped-VMEM limit (None -> keep default).
    """
    mib = 1024 * 1024
    try:
        cap = int(pltpu.get_tpu_info().vmem_capacity_bytes)
    except Exception:
        cap = 64 * mib  # v7x-safe fallback (64 MiB per TensorCore)
    block_budget = max(4 * mib, (3 * cap) // 8 - 4 * mib)
    vmem_limit = min(cap - 8 * mib, (3 * cap) // 4)
    if vmem_limit < 32 * mib:
        vmem_limit = None
    return block_budget, vmem_limit


def _choose_tiles(P, in_plane_bytes, out_plane_bytes, block_budget_bytes,
                  compute_elems_per_plane):
    """Pick (tc, mc): planes per grid step and planes per in-kernel compute chunk."""
    # Keep per-inner-iteration live f32 values to a few hundred KB.
    mc = max(1, min(P, (64 * 1024) // max(int(compute_elems_per_plane), 1)))
    # Double-buffered (in + out) blocks must fit the budget.
    per_plane = 2 * (int(in_plane_bytes) + int(out_plane_bytes))
    tc = max(1, min(P, int(block_budget_bytes) // max(per_plane, 1)))
    if P >= 2:
        tc = min(tc, max(1, P // 2))  # keep >= 2 grid steps (v7x: 2 TensorCores)
    if tc <= mc:
        mc = tc
    else:
        tc = (tc // mc) * mc          # inner loop trip count = tc // mc
    return tc, mc


def squeeze_forward(x, log_det=None, reverse=False, *, factor=2):
    """Mirror of torchglow Squeeze.forward. x: (B, C, H, W). Returns (z, log_det)."""
    assert factor >= 1 and isinstance(factor, int)
    if factor == 1:
        # Mirrors the PyTorch module, which returns x (not a tuple) here.
        return x

    b, c, h, w = x.shape
    f = factor
    f2 = f * f
    dtype = x.dtype
    isz = jnp.dtype(dtype).itemsize
    block_budget, vmem_limit = _vmem_budgets()

    if not reverse:
        # ---------------- forward: space-to-depth ----------------
        assert h % f == 0 and w % f == 0, (b, c, h, w)
        hf, wf = h // f, w // f
        fw = f * w                       # lane width of the (P, hf, f*w) input view
        P = b * c

        # 0/1 column-selection matrices: S[j][w_in, w'] = (w_in == f*w' + j).
        S = (jnp.arange(w)[None, :, None]
             == (f * jnp.arange(wf)[None, None, :]
                 + jnp.arange(f)[:, None, None])).astype(dtype)      # (f, w, wf)

        in_pp = _round_up(hf, 8) * _round_up(fw, 128) * isz
        out_pp = f2 * _round_up(hf, 8) * _round_up(wf, 128) * isz
        tc, mc = _choose_tiles(P, in_pp, out_pp, block_budget,
                               compute_elems_per_plane=h * w)
        n_chunks = tc // mc

        def fwd_kernel(x_ref, s_ref, o_ref):
            # x_ref: (tc, hf, f*w)  view of the input planes (row group i lives
            #                       in lanes [i*w, (i+1)*w))
            # s_ref: (f, w, wf)     0/1 lane-selection matrices
            # o_ref: (tc, f, f, hf, wf)
            def chunk(m, carry):
                base = pl.multiple_of(m * mc, mc)
                x2 = x_ref[pl.ds(base, mc)].reshape(mc * hf, fw)
                for i in range(f):
                    a = x2[:, i * w:(i + 1) * w]          # rows h'*f+i, all planes
                    for j in range(f):
                        r = jnp.dot(a, s_ref[j],
                                    preferred_element_type=jnp.float32)
                        o_ref[pl.ds(base, mc), i, j] = (
                            r.reshape(mc, hf, wf).astype(o_ref.dtype))
                return carry
            lax.fori_loop(0, n_chunks, chunk, 0)

        xv = x.reshape(P, hf, fw)                          # free contiguous view
        out = pl.pallas_call(
            fwd_kernel,
            out_shape=jax.ShapeDtypeStruct((P, f, f, hf, wf), dtype),
            grid=(pl.cdiv(P, tc),),
            in_specs=[
                pl.BlockSpec((tc, hf, fw), lambda p: (p, 0, 0)),
                pl.BlockSpec((f, w, wf), lambda p: (0, 0, 0)),
            ],
            out_specs=pl.BlockSpec((tc, f, f, hf, wf),
                                   lambda p: (p, 0, 0, 0, 0)),
            compiler_params=pltpu.CompilerParams(
                dimension_semantics=("parallel",),
                vmem_limit_bytes=vmem_limit),
            cost_estimate=pl.CostEstimate(
                flops=2 * P * h * w * w,
                transcendentals=0,
                bytes_accessed=2 * int(x.size) * isz),
        )(xv, S)
        z = out.reshape(b, c * f2, hf, wf)                 # free contiguous view
        return z, log_det

    # ---------------- reverse: depth-to-space ----------------
    assert c % f2 == 0, "{}".format(c)
    cf = c // f2
    Wout = w * f                      # output width
    lane_out = f * Wout               # lane width of the (P, h, f*Wout) output view
    P = b * cf

    # Transposed selection: St[j][w', w_out] = (w_out == f*w' + j).
    St = (jnp.arange(Wout)[None, None, :]
          == (f * jnp.arange(w)[None, :, None]
              + jnp.arange(f)[:, None, None])).astype(dtype)         # (f, w, Wout)

    in_pp = f2 * _round_up(h, 8) * _round_up(w, 128) * isz
    out_pp = _round_up(h, 8) * _round_up(lane_out, 128) * isz
    tc, mc = _choose_tiles(P, in_pp, out_pp, block_budget,
                           compute_elems_per_plane=h * w * f)
    n_chunks = tc // mc

    def rev_kernel(y_ref, st_ref, o_ref):
        # y_ref:  (tc, f, f, h, w)   squeezed planes
        # st_ref: (f, w, Wout)       transposed 0/1 lane-scatter matrices
        # o_ref:  (tc, h, f*Wout)    output view; row group i -> lanes [i*Wout, ...)
        def chunk(m, carry):
            base = pl.multiple_of(m * mc, mc)
            for i in range(f):
                acc = None
                for j in range(f):
                    yj = y_ref[pl.ds(base, mc), i, j].reshape(mc * h, w)
                    r = jnp.dot(yj, st_ref[j], preferred_element_type=jnp.float32)
                    acc = r if acc is None else acc + r
                o_ref[pl.ds(base, mc), :, i * Wout:(i + 1) * Wout] = (
                    acc.reshape(mc, h, Wout).astype(o_ref.dtype))
            return carry
        lax.fori_loop(0, n_chunks, chunk, 0)

    yv = x.reshape(P, f, f, h, w)                          # free contiguous view
    out = pl.pallas_call(
        rev_kernel,
        out_shape=jax.ShapeDtypeStruct((P, h, lane_out), dtype),
        grid=(pl.cdiv(P, tc),),
        in_specs=[
            pl.BlockSpec((tc, f, f, h, w), lambda p: (p, 0, 0, 0, 0)),
            pl.BlockSpec((f, w, Wout), lambda p: (0, 0, 0)),
        ],
        out_specs=pl.BlockSpec((tc, h, lane_out), lambda p: (p, 0, 0)),
        compiler_params=pltpu.CompilerParams(
            dimension_semantics=("parallel",),
            vmem_limit_bytes=vmem_limit),
        cost_estimate=pl.CostEstimate(
            flops=2 * P * h * w * Wout * f2,
            transcendentals=0,
            bytes_accessed=2 * int(x.size) * isz),
    )(yv, St)
    z = out.reshape(b, cf, h * f, Wout)                    # free contiguous view
    return z, log_det


if __name__ == "__main__":
    key = jax.random.PRNGKey(0)
    N, C, H, W = 2, 4, 16, 16
    FACTOR = 2
    x = jax.random.normal(key, (N, C, H, W), dtype=jnp.float32)
    log_det0 = jnp.zeros((N,), dtype=jnp.float32)

    # Forward squeeze via the Pallas kernel.
    z, log_det = squeeze_forward(x, log_det=log_det0, reverse=False, factor=FACTOR)
    z = jax.block_until_ready(z)

    # Pure-JAX reference replicating the PyTorch view/permute/view.
    f = FACTOR
    ref = (x.reshape(N, C, H // f, f, W // f, f)
             .transpose(0, 1, 3, 5, 2, 4)
             .reshape(N, C * f * f, H // f, W // f))
    assert z.shape == (N, C * f * f, H // f, W // f)
    assert bool(jnp.array_equal(z, ref)), "forward mismatch"
    assert bool(jnp.array_equal(log_det, log_det0))

    # Reverse (unsqueeze) round-trip through the Pallas kernel.
    xr, _ = squeeze_forward(z, log_det=log_det0, reverse=True, factor=FACTOR)
    xr = jax.block_until_ready(xr)
    assert bool(jnp.array_equal(xr, x)), "reverse round-trip mismatch"

    print("KERNEL_OK")
</pallas_src>

<mosaic_0001>
module attributes {stable_mosaic.version = 11 : i64} {
  func.func @fwd_kernel(%arg0: i32, %arg1: memref<4x8x32xf32, #tpu.memory_space<vmem>>, %arg2: memref<2x16x8xf32, #tpu.memory_space<vmem>>, %arg3: memref<4x2x2x8x8xf32, #tpu.memory_space<vmem>>) attributes {dimension_semantics = [#tpu.dimension_semantics<parallel>], iteration_bounds = array<i64: 2>, scalar_prefetch = 0 : i64, scratch_operands = 0 : i64, tpu.core_type = #tpu.core_type<tc>, window_params = [{transform_indices = @transform_0, window_bounds = array<i64: 4, 8, 32>}, {pipeline_mode = #tpu.pipeline_mode<synchronous>, transform_indices = @transform_1, window_bounds = array<i64: 2, 16, 8>}, {transform_indices = @transform_2, window_bounds = array<i64: 4, 2, 2, 8, 8>}]} {
    %c0_i32 = arith.constant 0 : i32
    %c4_i32 = arith.constant 4 : i32
    %0 = arith.muli %c0_i32, %c4_i32 : i32
    %1 = tpu.assume_multiple %0, 4 : i32
    %2 = arith.index_cast %1 : i32 to index
    %c0 = arith.constant 0 : index
    %c0_0 = arith.constant 0 : index
    %3 = vector.load %arg1[%2, %c0, %c0_0] : memref<4x8x32xf32, #tpu.memory_space<vmem>>, vector<4x8x32xf32>
    %4 = vector.shape_cast %3 : vector<4x8x32xf32> to vector<32x32xf32>
    %5 = vector.extract_strided_slice %4 {offsets = [0, 0], sizes = [32, 16], strides = [1, 1]} : vector<32x32xf32> to vector<32x16xf32>
    %c0_1 = arith.constant 0 : index
    %c0_2 = arith.constant 0 : index
    %c0_3 = arith.constant 0 : index
    %6 = vector.load %arg2[%c0_1, %c0_2, %c0_3] : memref<2x16x8xf32, #tpu.memory_space<vmem>>, vector<1x16x8xf32>
    %7 = vector.shape_cast %6 : vector<1x16x8xf32> to vector<16x8xf32>
    %cst = arith.constant dense<0.000000e+00> : vector<32x8xf32>
    %8 = tpu.matmul %5, %7, %cst {dimension_numbers = #tpu.dot_dimension_numbers<[1], [0], [0], [1], [0, 0, 1, 1], [], []>} : vector<32x16xf32>, vector<16x8xf32>, vector<32x8xf32> -> vector<32x8xf32>
    %9 = vector.shape_cast %8 : vector<32x8xf32> to vector<4x8x8xf32>
    %10 = arith.index_cast %1 : i32 to index
    %c0_4 = arith.constant 0 : index
    %c0_5 = arith.constant 0 : index
    %c0_6 = arith.constant 0 : index
    %c0_7 = arith.constant 0 : index
    %11 = vector.load %arg3[%10, %c0_4, %c0_5, %c0_6, %c0_7] : memref<4x2x2x8x8xf32, #tpu.memory_space<vmem>>, vector<4x1x1x8x8xf32>
    %12 = vector.shape_cast %11 : vector<4x1x1x8x8xf32> to vector<4x8x8xf32>
    %13 = vector.shape_cast %9 : vector<4x8x8xf32> to vector<4x1x1x8x8xf32>
    tpu.vector_store %arg3[%10, %c0_4, %c0_5, %c0_6, %c0_7], %13 {strides = array<i32>} : memref<4x2x2x8x8xf32, #tpu.memory_space<vmem>>, vector<4x1x1x8x8xf32>,
    %c1 = arith.constant 1 : index
    %c0_8 = arith.constant 0 : index
    %c0_9 = arith.constant 0 : index
    %14 = vector.load %arg2[%c1, %c0_8, %c0_9] : memref<2x16x8xf32, #tpu.memory_space<vmem>>, vector<1x16x8xf32>
    %15 = vector.shape_cast %14 : vector<1x16x8xf32> to vector<16x8xf32>
    %cst_10 = arith.constant dense<0.000000e+00> : vector<32x8xf32>
    %16 = tpu.matmul %5, %15, %cst_10 {dimension_numbers = #tpu.dot_dimension_numbers<[1], [0], [0], [1], [0, 0, 1, 1], [], []>} : vector<32x16xf32>, vector<16x8xf32>, vector<32x8xf32> -> vector<32x8xf32>
    %17 = vector.shape_cast %16 : vector<32x8xf32> to vector<4x8x8xf32>
    %18 = arith.index_cast %1 : i32 to index
    %c0_11 = arith.constant 0 : index
    %c1_12 = arith.constant 1 : index
    %c0_13 = arith.constant 0 : index
    %c0_14 = arith.constant 0 : index
    %19 = vector.load %arg3[%18, %c0_11, %c1_12, %c0_13, %c0_14] : memref<4x2x2x8x8xf32, #tpu.memory_space<vmem>>, vector<4x1x1x8x8xf32>
    %20 = vector.shape_cast %19 : vector<4x1x1x8x8xf32> to vector<4x8x8xf32>
    %21 = vector.shape_cast %17 : vector<4x8x8xf32> to vector<4x1x1x8x8xf32>
    tpu.vector_store %arg3[%18, %c0_11, %c1_12, %c0_13, %c0_14], %21 {strides = array<i32>} : memref<4x2x2x8x8xf32, #tpu.memory_space<vmem>>, vector<4x1x1x8x8xf32>,
    %22 = vector.extract_strided_slice %4 {offsets = [0, 16], sizes = [32, 16], strides = [1, 1]} : vector<32x32xf32> to vector<32x16xf32>
    %c0_15 = arith.constant 0 : index
    %c0_16 = arith.constant 0 : index
    %c0_17 = arith.constant 0 : index
    %23 = vector.load %arg2[%c0_15, %c0_16, %c0_17] : memref<2x16x8xf32, #tpu.memory_space<vmem>>, vector<1x16x8xf32>
    %24 = vector.shape_cast %23 : vector<1x16x8xf32> to vector<16x8xf32>
    %cst_18 = arith.constant dense<0.000000e+00> : vector<32x8xf32>
    %25 = tpu.matmul %22, %24, %cst_18 {dimension_numbers = #tpu.dot_dimension_numbers<[1], [0], [0], [1], [0, 0, 1, 1], [], []>} : vector<32x16xf32>, vector<16x8xf32>, vector<32x8xf32> -> vector<32x8xf32>
    %26 = vector.shape_cast %25 : vector<32x8xf32> to vector<4x8x8xf32>
    %27 = arith.index_cast %1 : i32 to index
    %c1_19 = arith.constant 1 : index
    %c0_20 = arith.constant 0 : index
    %c0_21 = arith.constant 0 : index
    %c0_22 = arith.constant 0 : index
    %28 = vector.load %arg3[%27, %c1_19, %c0_20, %c0_21, %c0_22] : memref<4x2x2x8x8xf32, #tpu.memory_space<vmem>>, vector<4x1x1x8x8xf32>
    %29 = vector.shape_cast %28 : vector<4x1x1x8x8xf32> to vector<4x8x8xf32>
    %30 = vector.shape_cast %26 : vector<4x8x8xf32> to vector<4x1x1x8x8xf32>
    tpu.vector_store %arg3[%27, %c1_19, %c0_20, %c0_21, %c0_22], %30 {strides = array<i32>} : memref<4x2x2x8x8xf32, #tpu.memory_space<vmem>>, vector<4x1x1x8x8xf32>,
    %c1_23 = arith.constant 1 : index
    %c0_24 = arith.constant 0 : index
    %c0_25 = arith.constant 0 : index
    %31 = vector.load %arg2[%c1_23, %c0_24, %c0_25] : memref<2x16x8xf32, #tpu.memory_space<vmem>>, vector<1x16x8xf32>
    %32 = vector.shape_cast %31 : vector<1x16x8xf32> to vector<16x8xf32>
    %cst_26 = arith.constant dense<0.000000e+00> : vector<32x8xf32>
    %33 = tpu.matmul %22, %32, %cst_26 {dimension_numbers = #tpu.dot_dimension_numbers<[1], [0], [0], [1], [0, 0, 1, 1], [], []>} : vector<32x16xf32>, vector<16x8xf32>, vector<32x8xf32> -> vector<32x8xf32>
    %34 = vector.shape_cast %33 : vector<32x8xf32> to vector<4x8x8xf32>
    %35 = arith.index_cast %1 : i32 to index
    %c1_27 = arith.constant 1 : index
    %c1_28 = arith.constant 1 : index
    %c0_29 = arith.constant 0 : index
    %c0_30 = arith.constant 0 : index
    %36 = vector.load %arg3[%35, %c1_27, %c1_28, %c0_29, %c0_30] : memref<4x2x2x8x8xf32, #tpu.memory_space<vmem>>, vector<4x1x1x8x8xf32>
    %37 = vector.shape_cast %36 : vector<4x1x1x8x8xf32> to vector<4x8x8xf32>
    %38 = vector.shape_cast %34 : vector<4x8x8xf32> to vector<4x1x1x8x8xf32>
    tpu.vector_store %arg3[%35, %c1_27, %c1_28, %c0_29, %c0_30], %38 {strides = array<i32>} : memref<4x2x2x8x8xf32, #tpu.memory_space<vmem>>, vector<4x1x1x8x8xf32>,
    %c1_i32 = arith.constant 1 : i32
    return
  }
  func.func @transform_0(%arg0: i32) -> (i32, i32, i32) {
    %c0_i32 = arith.constant 0 : i32
    %c0_i32_0 = arith.constant 0 : i32
    %c0_i32_1 = arith.constant 0 : i32
    return %arg0, %c0_i32, %c0_i32_0 : i32, i32, i32
  }
  func.func @transform_1(%arg0: i32) -> (i32, i32, i32) {
    %c0_i32 = arith.constant 0 : i32
    %c0_i32_0 = arith.constant 0 : i32
    %c0_i32_1 = arith.constant 0 : i32
    %c0_i32_2 = arith.constant 0 : i32
    return %c0_i32, %c0_i32_0, %c0_i32_1 : i32, i32, i32
  }
  func.func @transform_2(%arg0: i32) -> (i32, i32, i32, i32, i32) {
    %c0_i32 = arith.constant 0 : i32
    %c0_i32_0 = arith.constant 0 : i32
    %c0_i32_1 = arith.constant 0 : i32
    %c0_i32_2 = arith.constant 0 : i32
    %c0_i32_3 = arith.constant 0 : i32
    return %arg0, %c0_i32, %c0_i32_0, %c0_i32_1, %c0_i32_2 : i32, i32, i32, i32, i32
  }
}

</mosaic_0001>

<bundles_post_ra>
// kernel: tpu_custom_call.1
= control target key start
LH: loop header
LB: loop body
LE: loop exit
PB: predicated region body
PF: predicated region fallthrough
CT: control target
= control target key end

     0   :  { %7 = vsyncpa [#allocation3], 0  ;;  %s1191_s0 = inlined_call_operand.hbm [shape: f32[8,8,32], index: 0, kind: input, shape index: {}]   ;;  %s1192_s1 = inlined_call_operand.vmem [shape: f32[2,16,8], index: 1, kind: input, shape index: {}]   ;;  %s1193_s2 = inlined_call_operand.hbm [shape: f32[8,2,2,8,8], index: 2, kind: output, shape index: {}]  }
   0x1   :  { %9 = vsyncpa [#allocation3 + $0x1], 0 }
   0x2   :  { %10 = vsyncpa [#allocation4], 0 }
   0x3   :  { %12 = vsyncpa [#allocation4 + $0x1], 0  ;;  %s965_s9 = smov 0   ;;  %s967_s10 = smov 0  }
   0x4   :  { %s969_s11 = smov 0   ;;  %s971_s12 = smov 0  }
   0x5 LB: > { %s986_s13 = sadd.s32 4294967295, %s941_s12   ;;  %s664_s14 = sadd.s32 4294967294, %s941_s12   ;;  %s941_s12 = sphi %s971_s12, %s1206_s12   ;;  %s937_s11 = sphi %s969_s11, %s1205_s11   ;;  %s933_s10 = sphi %s967_s10, %s1204_s10   ;;  %s929_s9 = sphi %s965_s9, %s1203_s9  }
   0x6   : > { %s990_s15 = sadd.s32 1, %s941_s12   ;;  %s25_s16 = sadd.s32 1, %s937_s11 }
   0x7   : > { %s22_s17 = ssub.s32 %s941_s12, %s990_s15  ;;  %p32_p0 = scmp.ne.s32.totalorder %s937_s11, %s933_s10 }
   0x8   : > { %p23_p1 = scmp.eq.s32.totalorder %s22_s17, 0  ;;  %p33_p2 = scmp.eq.s32.totalorder %s941_s12, 0 }
   0x9   : > { %p38_p3 = scmp.ne.s32.totalorder %s933_s10, %s929_s9  ;;  %p39_p4 = scmp.eq.s32.totalorder %s986_s13, 0 }
   0xa   : > { %s1002_s18 = scalar_select %p23_p1, %s937_s11, %s25_s16  }
   0xb   : > { %p1004_p5 = por %p33_p2, %p32_p0  ;;  %p1008_p6 = por %p39_p4, %p38_p3 }
   0xc   : > { %p83_p7 = scmp.eq.s32.totalorder %s986_s13, 1  ;;  %p89_p8 = scmp.eq.s32.totalorder %s664_s14, 1 }
   0xd   : > { %p806_p10 = scmp.lt.s32.totalorder %s941_s12, 2  ;;  %s112_s23 = sand.u32 1, %s937_s11  }
   0xe   : > { %p1015_p11 = por %p83_p7, %p32_p0  ;;  %p1019_p12 = por %p89_p8, %p38_p3 }
   0xf   : > { %s711_s24 = sshll.u32 %s941_s12, 9  ;;  %s667_s25 = sshll.u32 %s112_s23, 5 }
  0x10   : > { %s1197_s21 = scalar_select %p1015_p11, 1, 0 }
  0x11   : > { %s1198_s22 = scalar_select %p1019_p12, 1, 0 }
  0x12   : > { %s1028_s28 = scalar_lea.hbm %s1191_s0, %s711_s24  ;;  %s116_s29 = scalar_lea.vmem [#allocation2], %s667_s25 }
  0x13   : > { %s123_s30 = sshll.u32 %s116_s29, 4  ;;  %p1032_p13 = pnand %p806_p10, %p1004_p5  ;;  %s1036_s30 = int_to_ptr.vmem [resolvable:$true] %s123_s30 }
  0x14   : > { %s1038_s4 = scalar_lea.sflag [#allocation3], %s112_s23  ;;  %s845_s5 = scalar_lea.hbm %s1028_s28, 512 }
  0x15   : > { %p846_p0 = scmp.ne.s32.totalorder %s1028_s28, %s845_s5  ;;  %p847_p1 = pneg %p1032_p13 }
  0x16   : > { %s850_s8 = scalar_lea.hbm %s1191_s0, 1024  ;;  %p851_p4 = scmp.lt.u32.totalorder %s1028_s28, %s1191_s0 }
  0x17   : > { %p848_p2 = pnand %p847_p1, %p846_p0  ;;  %p852_p5 = scmp.lt.u32.totalorder %s850_s8, %s845_s5 }
  0x18   : > { %p854_p8 = scmp.lt.u32.totalorder %s845_s5, %s1028_s28 }
  0x19   : > { %p849_p3 = pneg %p848_p2  ;;  %p853_p7 = por %p852_p5, %p851_p4 }
  0x1b   : > { %p855_p10 = por %p854_p8, %p853_p7 }
  0x1d   : > { %p856_p9 = pnand %p855_p10, %p849_p3 }
  0x1f   : > { %859 = shalt.err (!%p856_p9)
}
  0x20   : > { %s860_s17 = scalar_lea.vmem %s1036_s30, 512  ;;  %s943_s19 = smov [#allocation2]  }
  0x21   : > { %p861_p0 = scmp.ne.s32.totalorder %s1036_s30, %s860_s17  ;;  %s865_s23 = sshll.u32 %s943_s19, 4  ;;  %s866_s23 = int_to_ptr.vmem [resolvable:$false] %s865_s23 }
  0x22   : > { %s867_s24 = scalar_lea.vmem %s866_s23, 1024  ;;  %p868_p11 = scmp.lt.s32.totalorder %s1036_s30, %s866_s23 }
  0x23   : > { %p863_p2 = pnand %p861_p0, %p847_p1  ;;  %p869_p4 = scmp.lt.s32.totalorder %s867_s24, %s860_s17 }
  0x25   : > { %p864_p12 = pneg %p863_p2  ;;  %p870_p5 = por %p869_p4, %p868_p11 }
  0x27   : > { %p871_p7 = pnand %p870_p5, %p864_p12 }
  0x29   : > { %874 = shalt.err (!%p871_p7)
}
  0x2a   : > { %s944_s25 = smov 128   ;;  %s945_s26 = smov 8  }
  0x2b   : > { %801 = dma.hbm_to_vmem [thread:$0]  (!%p1032_p13), %s1028_s28, 512, %s1036_s30, %s1038_s4, %s944_s25, %s944_s25, %s945_s26  }
  0x2c   : > { %p670_p9 = scmp.ge.s32.totalorder %s941_s12, 1  ;;  %p131_p1 = scmp.lt.s32.totalorder %s941_s12, 3 }
  0x2e   : > { %p132_p3 = pnand %p670_p9, %p131_p1 }
  0x2f   : > { %s1069_s27 = sand.u32 (!%p132_p3), 1, %s933_s10  }
  0x30   : > { %135 = sbr.rel (%p132_p3) target bundleno = 408 (0x198), region = 28  ;;  %s671_s29 = sshll.u32 (!%p132_p3), %s1069_s27, 5 }
  0x31   : > { %s138_s5 = scalar_lea.sflag (!%p132_p3), [#allocation3], %s1069_s27  ;;  %s141_s6 = scalar_lea.vmem (!%p132_p3), [#allocation2], %s671_s29 }
  0x37   : > { %920 = dma.done.wait (%p1008_p6), %s138_s5, 512  }
  0x38   : > { %922 = vsyncadd (%p1008_p6), %s138_s5, 4294966784  ;;  %vm172_vm0 = vcmask 130048   ;;  %v166_v0 = vld [vmem:[%s141_s6] sm:$0xff]  ;;  %v168_v1 = vld [vmem:[%s141_s6 + $0x10] sm:$0xff]  ;;  %s946_s28 = smov 112   ;;  %s672_s17 = sshll.u32 %s1069_s27, 7 }
  0x39   : > { %v167_v2 = vld [vmem:[%s141_s6 + $0x8] sm:$0xff]  ;;  %373 = vrot.lane.b32.xlu0 %v166_v0, %s946_s28  ;;  %377 = vrot.lane.b32.xlu1 %v168_v1, %s946_s28  ;;  %v169_v3 = vld [vmem:[%s141_s6 + $0x18] sm:$0xff]  ;;  %vm272_vm1 = vcmask 64512   ;;  %s1106_s19 = scalar_lea.vmem [#allocation5], %s672_s17  ;;  %s713_s23 = sshll.u32 %s986_s13, 11 }
  0x3a   : > { %v170_v4 = vld [vmem:[%s1192_s1] sm:$0xff]  ;;  %v171_v5 = vld [vmem:[%s1192_s1 + $0x8] sm:$0xff]  ;;  %v677_v6 = vld [vmem:[%s1192_s1 + $0x10] sm:$0xff]  ;;  %742 = vmatprep.mubr.msk.f32.mxu0 %vm172_vm0, %v166_v0  ;;  %752 = vmatprep.mubr.msk.f32.mxu1 %vm172_vm0, %v166_v0  ;;  %s588_s24 = sshll.u32 %s1106_s19, 4  ;;  %s1137_s29 = scalar_lea.hbm %s1193_s2, %s713_s23  ;;  %s1139_s24 = int_to_ptr.vmem [resolvable:$true] %s588_s24 }
  0x3b   : > { %v678_v7 = vld [vmem:[%s1192_s1 + $0x18] sm:$0xff]  ;;  %v778_v8 = vpack.c.bf16 %v171_v5, %v170_v4  ;;  %s574_s13 = scalar_lea.sflag [#allocation4], %s1069_s27  ;;  %s875_s5 = scalar_lea.vmem %s1139_s24, 2048 }
  0x3c   : > { %v782_v9 = vpack.c.bf16 %v678_v7, %v677_v6  ;;  %p876_p6 = scmp.ne.s32.totalorder %s1139_s24, %s875_s5  ;;  %p1200_p11 = scmp.ne.s32.totalorder %s1197_s21, 0 }
  0x3d   : > { %375 = vrot.lane.b32.xlu0 %v167_v2, %s946_s28  ;;  %379 = vrot.lane.b32.xlu1 %v169_v3, %s946_s28  ;;  %s947_s6 = smov [#allocation5]  }
  0x3e   : > { %779 = vmatprep.subr.bf16.mxu0 %v778_v8  ;;  %783 = vmatprep.subr.bf16.mxu1 %v782_v9  ;;  %p877_p12 = pnand %p876_p6, %p1200_p11  ;;  %s879_s28 = sshll.u32 %s947_s6, 4  ;;  %s880_s28 = int_to_ptr.vmem [resolvable:$false] %s879_s28 }
  0x3f   : > { %781 = vmatpush3.bf16.msra.mxu0 %v778_v8  ;;  %785 = vmatpush3.bf16.msra.mxu1 %v782_v9  ;;  %s881_s30 = scalar_lea.vmem %s880_s28, 4096  ;;  %p882_p8 = scmp.lt.s32.totalorder %s1139_s24, %s880_s28 }
  0x40   : > { %787 = vmatprep.subr.bf16.mxu0 %v778_v8  ;;  %791 = vmatprep.subr.bf16.mxu1 %v782_v9  ;;  %p878_p13 = pneg %p877_p12  ;;  %p883_p10 = scmp.lt.s32.totalorder %s881_s30, %s875_s5 }
  0x42   : > { %743 = vmatmul.mubr.msk.f32.vlgmr.msra.gmra.mrb[0].mxu0 %vm172_vm0, %v167_v2  ;;  %753 = vmatmul.mubr.msk.f32.vlgmr.msra.gmra.mrb[0].mxu1 %vm172_vm0, %v167_v2  ;;  %p884_p0 = por %p883_p10, %p882_p8 }
  0x43   : > { %789 = vmatpush3.bf16.msra.mxu0 %v778_v8  ;;  %793 = vmatpush3.bf16.msra.mxu1 %v782_v9 }
  0x44   : > { %745 = vmatprep.mubr.msk.f32.mxu0 %vm172_vm0, %v168_v1  ;;  %755 = vmatprep.mubr.msk.f32.mxu1 %vm172_vm0, %v168_v1  ;;  %p885_p2 = pnand %p884_p0, %p878_p13 }
  0x46   : > { %746 = vmatmul.mubr.msk.f32.gmra.mrb[2].mxu0 %vm172_vm0, %v169_v3  ;;  %756 = vmatmul.mubr.msk.f32.gmra.mrb[2].mxu1 %vm172_vm0, %v169_v3 }
  0xab   : > { %v374_v10 = vpop.permute.xlu0 %373  ;;  %v378_v11 = vpop.permute.xlu1 %377 }
  0xac   : > { %762 = vmatprep.mubr.msk.f32.mxu0 %vm172_vm0, %v374_v10  ;;  %772 = vmatprep.mubr.msk.f32.mxu1 %vm172_vm0, %v374_v10 }
  0xaf   : > { %v376_v12 = vpop.permute.xlu0 %375  ;;  %v380_v13 = vpop.permute.xlu1 %379 }
  0xb0   : > { %763 = vmatmul.mubr.msk.f32.vlgmr.msra.gmra.mrb[4].mxu0 %vm172_vm0, %v376_v12  ;;  %773 = vmatmul.mubr.msk.f32.vlgmr.msra.gmra.mrb[4].mxu1 %vm172_vm0, %v376_v12 }
  0xb1   : > { %765 = vmatprep.mubr.msk.f32.mxu0 %vm172_vm0, %v378_v11  ;;  %775 = vmatprep.mubr.msk.f32.mxu1 %vm172_vm0, %v378_v11 }
  0xb4   : > { %766 = vmatmul.mubr.msk.f32.gmra.mrb[6].mxu0 %vm172_vm0, %v380_v13  ;;  %776 = vmatmul.mubr.msk.f32.gmra.mrb[6].mxu1 %vm172_vm0, %v380_v13 }
 0x115   : > { %v744_v14 = vpop.f32.mrb[0].mxu0  ;;  %v754_v15 = vpop.f32.mrb[0].mxu1 }
 0x116   : > { %274 = vst.msk [vmem:[%s1106_s19 + $0x20] sm:$0xff] %vm272_vm1, %v744_v14  ;;  %684 = vst.msk [vmem:[%s1106_s19 + $0x28] sm:$0xff] %vm272_vm1, %v754_v15  ;;  %v251_v16 = vpop.f32.mrb[1].mxu0  ;;  %v346_v17 = vpop.f32.mrb[1].mxu1 }
 0x117   : > { %273 = vst.msk [vmem:[%s1106_s19] sm:$0xff] %vm272_vm1, %v251_v16  ;;  %683 = vst.msk [vmem:[%s1106_s19 + $0x8] sm:$0xff] %vm272_vm1, %v346_v17 }
 0x119   : > { %v747_v18 = vpop.f32.mrb[2].mxu0  ;;  %v757_v19 = vpop.f32.mrb[2].mxu1 }
 0x11a   : > { %276 = vst.msk [vmem:[%s1106_s19 + $0x60] sm:$0xff] %vm272_vm1, %v747_v18  ;;  %686 = vst.msk [vmem:[%s1106_s19 + $0x68] sm:$0xff] %vm272_vm1, %v757_v19  ;;  %v261_v20 = vpop.f32.mrb[3].mxu0  ;;  %v356_v21 = vpop.f32.mrb[3].mxu1 }
 0x11b   : > { %275 = vst.msk [vmem:[%s1106_s19 + $0x40] sm:$0xff] %vm272_vm1, %v261_v20  ;;  %685 = vst.msk [vmem:[%s1106_s19 + $0x48] sm:$0xff] %vm272_vm1, %v356_v21 }
 0x183   : > { %v764_v22 = vpop.f32.mrb[4].mxu0  ;;  %v774_v23 = vpop.f32.mrb[4].mxu1 }
 0x184   : > { %692 = vst.msk [vmem:[%s1106_s19 + $0x30] sm:$0xff] %vm272_vm1, %v764_v22  ;;  %702 = vst.msk [vmem:[%s1106_s19 + $0x38] sm:$0xff] %vm272_vm1, %v774_v23  ;;  %v455_v24 = vpop.f32.mrb[5].mxu0  ;;  %v548_v25 = vpop.f32.mrb[5].mxu1 }
 0x185   : > { %691 = vst.msk [vmem:[%s1106_s19 + $0x10] sm:$0xff] %vm272_vm1, %v455_v24  ;;  %701 = vst.msk [vmem:[%s1106_s19 + $0x18] sm:$0xff] %vm272_vm1, %v548_v25 }
 0x187   : > { %v767_v26 = vpop.f32.mrb[6].mxu0  ;;  %v777_v27 = vpop.f32.mrb[6].mxu1 }
 0x188   : > { %694 = vst.msk [vmem:[%s1106_s19 + $0x70] sm:$0xff] %vm272_vm1, %v767_v26  ;;  %704 = vst.msk [vmem:[%s1106_s19 + $0x78] sm:$0xff] %vm272_vm1, %v777_v27  ;;  %v465_v28 = vpop.f32.mrb[7].mxu0  ;;  %v558_v29 = vpop.f32.mrb[7].mxu1 }
 0x189   : > { %693 = vst.msk [vmem:[%s1106_s19 + $0x50] sm:$0xff] %vm272_vm1, %v465_v28  ;;  %703 = vst.msk [vmem:[%s1106_s19 + $0x58] sm:$0xff] %vm272_vm1, %v558_v29 }
 0x18a   : > { %888 = shalt.err (!%p885_p2)
}
 0x18b   : > { %s889_s3 = scalar_lea.hbm %s1137_s29, 2048  ;;  %s893_s8 = scalar_lea.hbm %s1193_s2, 4096 }
 0x18c   : > { %p890_p4 = scmp.ne.s32.totalorder %s1137_s29, %s889_s3  ;;  %p894_p9 = scmp.lt.u32.totalorder %s1137_s29, %s1193_s2 }
 0x18d   : > { %p895_p1 = scmp.lt.u32.totalorder %s893_s8, %s889_s3  ;;  %p897_p6 = scmp.lt.u32.totalorder %s889_s3, %s1137_s29 }
 0x18e   : > { %p891_p5 = pnand %p890_p4, %p1200_p11 }
 0x18f   : > { %p896_p3 = por %p895_p1, %p894_p9 }
 0x190   : > { %p892_p7 = pneg %p891_p5 }
 0x191   : > { %p898_p12 = por %p897_p6, %p896_p3 }
 0x193   : > { %p899_p13 = pnand %p898_p12, %p892_p7 }
 0x195   : > { %902 = shalt.err (!%p899_p13)
}
 0x196   : > { %s948_s16 = smov 128   ;;  %s949_s17 = smov 8  }
 0x197   : > { %796 = dma.vmem_to_hbm [thread:$0]  (%p1200_p11), %s1139_s24, 2048, %s1137_s29, %s574_s13, %s948_s16, %s948_s16, %s949_s17  }
 0x198 PF: > { %s603_s19 = sand.u32 1, %s929_s9   ;;  %p1201_p8 = scmp.ne.s32.totalorder %s1198_s22, 0 }
 0x199   : > { %p1202_p10 = scmp.ge.s32.totalorder %s941_s12, 2  ;;  %s604_s23 = scalar_lea.sflag [#allocation4], %s603_s19 }
 0x19b   : > { %p803_p0 = pnand %p1202_p10, %p1201_p8 }
 0x19d   : > { %924 = dma.done.wait (!%p803_p0), %s604_s23, 2048  }
 0x19e   : > { %926 = vsyncadd (!%p803_p0), %s604_s23, 4294965248  ;;  %p15_p2 = scmp.ge.s32.totalorder %s990_s15, 4   ;;  %s1203_s9 = smov %s933_s10 }
 0x19f   : > { %s1204_s10 = smov %s937_s11  ;;  %s1205_s11 = smov %s1002_s18 }
 0x1a0   : > { %s1206_s12 = smov %s990_s15  ;;  %17 = sbr.rel (!%p15_p2) target bundleno = 5 (0x5), region = 79 }
 0x1a7   :  { %609 = vsyncpa [#allocation3], 1 }
 0x1a8   :  { %611 = vsyncpa [#allocation3 + $0x1], 1 }
 0x1a9   :  { %612 = vsyncpa [#allocation4], 1 }
 0x1aa   :  { %614 = vsyncpa [#allocation4 + $0x1], 1 }

</bundles_post_ra>
